<compile_context>
chip_gen: v5e
topology: v5e:2x2
jax: 0.10.0
libtpu: 0.0.40
codegen_flags: <defaults>
</compile_context>

<pallas_src>
import jax
import jax.numpy as jnp
from jax.experimental import pallas as pl
from jax.experimental.pallas import tpu as pltpu


def cond_suffix_kernel(x_ref,       # (TB, L, H) block of base-net output
                       wv_ref,      # (1, H)  fused  Wv @ Wo
                       ub_ref,      # (TB, 1) per-batch U-branch scalar (+ fused bias)
                       score_ref):  # (TB, L) output block
    x = x_ref[...]                                     # (TB, L, H)
    wv = wv_ref[...].reshape(1, 1, -1)                 # (1, 1, H)

    # V-branch: dot of every (b, l) row with the fused V vector -> (TB, L).
    # Accumulate in f32 (no-op for f32 inputs; keeps bf16 inputs accurate).
    d_v = jnp.sum((x * wv).astype(jnp.float32), axis=-1)

    score_ref[...] = (d_v + ub_ref[...]).astype(score_ref.dtype)


def _pick_batch_tile(B, L, H, itemsize, target_block_bytes=4 << 20, max_tb=1024):
    """Pick a batch tile: ~target-sized block, 8-aligned divisor of B (no pad)."""
    row_bytes = max(1, L * H * itemsize)
    cap = max(1, min(max_tb, target_block_bytes // row_bytes, B))

    def ok(t):  # Mosaic block constraint on the (B, L) / (B, 1) operands
        return t == B or t % 8 == 0

    divs = [d for d in range(1, B + 1) if B % d == 0 and d <= cap and ok(d)]
    if divs:
        tb = max(divs)
        # Prefer a grid of >= 2 steps (megacore / both v7x TCs) if it does not
        # shrink the tile by more than 2x.
        if B // tb == 1:
            smaller = [d for d in divs if d < B]
            if smaller and max(smaller) * 2 >= tb:
                tb = max(smaller)
        return tb, False
    # Fallback (rare: e.g. large prime B): pad the batch.  This materializes one
    # extra HBM copy of the big tensor -- acceptable only because it is rare.
    tb = min(max(8, (cap // 8) * 8), ((B + 7) // 8) * 8)
    return tb, True


def cond_suffix_net(out, sel_cols, params):
    """out: (B, L, H) base-net output, sel_cols: (B,) int -> score (B, L) f32."""
    B, L, H = out.shape
    wu, bu, wv, bv, wo, bo = params

    # ---- Algebraic fusion of the U / V / out Linears (Dropout == identity). ----
    wv_f = (wv @ wo).reshape(1, H).astype(jnp.float32)          # (1, H)
    wu_f = (wu @ wo).reshape(H).astype(jnp.float32)             # (H,)
    c = ((bu + bv) @ wo + bo).reshape(()).astype(jnp.float32)   # scalar

    # ---- U-branch: per-batch scalar bias, computed on the gathered rows only. ----
    # Touches B*H elements (1/L of the kernel's HBM traffic).  Note: indices are
    # clamped (PyTorch's gather would raise on out-of-range sel_cols).
    # TODO(synk): optionally validate sel_cols upstream instead of clamping.
    sel = jnp.clip(sel_cols.astype(jnp.int32), 0, L - 1)
    g = jnp.take_along_axis(out, sel[:, None, None], axis=1)[:, 0, :]   # (B, H)
    ub = (g.astype(jnp.float32) @ wu_f + c).reshape(B, 1)               # (B, 1)

    # ---- Batch tiling: big blocks, no padding of the big tensor. ----
    tb, need_pad = _pick_batch_tile(B, L, H, out.dtype.itemsize)
    x = out
    if need_pad:
        # TODO(synk): rare fallback path; extra HBM copy of `x` here.
        Bp = ((B + tb - 1) // tb) * tb
        x = jnp.pad(x, ((0, Bp - B), (0, 0), (0, 0)))
        ub = jnp.pad(ub, ((0, Bp - B), (0, 0)))
    Bp = x.shape[0]
    grid = (Bp // tb,)

    # VMEM budget: 2x double-buffered input block + x*wv temporary + outputs.
    block_bytes = tb * L * H * x.dtype.itemsize
    vmem_limit = int(min(48 << 20, max(32 << 20, 6 * block_bytes)))

    score = pl.pallas_call(
        cond_suffix_kernel,
        out_shape=jax.ShapeDtypeStruct((Bp, L), jnp.float32),
        grid=grid,
        in_specs=[
            pl.BlockSpec((tb, L, H), lambda i: (i, 0, 0)),   # out tile
            pl.BlockSpec((1, H), lambda i: (0, 0)),          # fused V vector (resident)
            pl.BlockSpec((tb, 1), lambda i: (i, 0)),         # per-batch U scalar
        ],
        out_specs=pl.BlockSpec((tb, L), lambda i: (i, 0)),
        compiler_params=pltpu.CompilerParams(
            dimension_semantics=("parallel",),
            vmem_limit_bytes=vmem_limit,
        ),
    )(x, wv_f, ub)
    return score[:B]


def reference(out, sel_cols, params):
    """Un-fused reference matching the PyTorch module (eval mode)."""
    wu, bu, wv, bv, wo, bo = params
    B = out.shape[0]
    g = out[jnp.arange(B), sel_cols]                     # (B, H)
    u = g @ wu + bu                                      # (B, H)
    v = out @ wv + bv                                    # (B, L, H)
    return ((u[:, None, :] + v) @ wo + bo).squeeze(-1)   # (B, L)


if __name__ == "__main__":
    # Small stand-in for (batch, MAX_NUM_OF_COL, hidden=768).
    B, L, H = 16, 16, 128

    key = jax.random.PRNGKey(0)
    ks = jax.random.split(key, 8)

    # "out" stands in for base_net(data_holder, X_id)[1] (base_net is external).
    out = jax.random.normal(ks[0], (B, L, H), dtype=jnp.float32)
    sel_cols = jax.random.randint(ks[1], (B,), 0, L, dtype=jnp.int32)

    scale = 1.0 / jnp.sqrt(jnp.float32(H))
    params = (
        jax.random.normal(ks[2], (H, H), jnp.float32) * scale,   # Wu  (u.weight.T)
        jax.random.normal(ks[3], (1, H), jnp.float32) * 0.01,    # bu
        jax.random.normal(ks[4], (H, H), jnp.float32) * scale,   # Wv  (v.weight.T)
        jax.random.normal(ks[5], (1, H), jnp.float32) * 0.01,    # bv
        jax.random.normal(ks[6], (H, 1), jnp.float32) * scale,   # Wo  (out[1].weight.T)
        jax.random.normal(ks[7], (1, 1), jnp.float32) * 0.01,    # bo
    )

    # Case 1: B=16 -> tb=8, grid of 2 ("parallel" axis exercises megacore path).
    score = jax.block_until_ready(cond_suffix_net(out, sel_cols, params))
    ref = reference(out, sel_cols, params)
    assert score.shape == (B, L), score.shape
    assert jnp.allclose(score, ref, atol=5e-4, rtol=5e-4)

    # Case 2: B=10 (no 8-aligned proper divisor) -> tb == B full-dim block path.
    B2 = 10
    out2 = jax.random.normal(ks[0], (B2, L, H), dtype=jnp.float32)
    sel2 = jax.random.randint(ks[1], (B2,), 0, L, dtype=jnp.int32)
    score2 = jax.block_until_ready(cond_suffix_net(out2, sel2, params))
    ref2 = reference(out2, sel2, params)
    assert score2.shape == (B2, L), score2.shape
    assert jnp.allclose(score2, ref2, atol=5e-4, rtol=5e-4)

    print("KERNEL_OK")
</pallas_src>

<mosaic_0001>
module attributes {stable_mosaic.version = 11 : i64} {
  func.func @cond_suffix_kernel(%arg0: i32, %arg1: memref<8x16x128xf32, #tpu.memory_space<vmem>>, %arg2: memref<1x128xf32, #tpu.memory_space<vmem>>, %arg3: memref<8x1xf32, #tpu.memory_space<vmem>>, %arg4: memref<8x16xf32, #tpu.memory_space<vmem>>) attributes {dimension_semantics = [#tpu.dimension_semantics<parallel>], iteration_bounds = array<i64: 2>, scalar_prefetch = 0 : i64, scratch_operands = 0 : i64, tpu.core_type = #tpu.core_type<tc>, window_params = [{transform_indices = @transform_0, window_bounds = array<i64: 8, 16, 128>}, {pipeline_mode = #tpu.pipeline_mode<synchronous>, transform_indices = @transform_1, window_bounds = array<i64: 1, 128>}, {transform_indices = @transform_2, window_bounds = array<i64: 8, 1>}, {transform_indices = @transform_3, window_bounds = array<i64: 8, 16>}]} {
    %c0 = arith.constant 0 : index
    %c0_0 = arith.constant 0 : index
    %c0_1 = arith.constant 0 : index
    %0 = vector.load %arg1[%c0, %c0_0, %c0_1] : memref<8x16x128xf32, #tpu.memory_space<vmem>>, vector<8x16x128xf32>
    %c0_2 = arith.constant 0 : index
    %c0_3 = arith.constant 0 : index
    %1 = vector.load %arg2[%c0_2, %c0_3] : memref<1x128xf32, #tpu.memory_space<vmem>>, vector<1x128xf32>
    %2 = vector.shape_cast %1 : vector<1x128xf32> to vector<1x1x128xf32>
    %3 = vector.broadcast %2 : vector<1x1x128xf32> to vector<8x16x128xf32>
    %4 = arith.mulf %0, %3 : vector<8x16x128xf32>
    %cst = arith.constant dense<0.000000e+00> : vector<8x16xf32>
    %5 = vector.multi_reduction <add>, %4, %cst [2] : vector<8x16x128xf32> to vector<8x16xf32>
    %c0_4 = arith.constant 0 : index
    %c0_5 = arith.constant 0 : index
    %6 = vector.load %arg3[%c0_4, %c0_5] : memref<8x1xf32, #tpu.memory_space<vmem>>, vector<8x1xf32>
    %7 = vector.broadcast %6 : vector<8x1xf32> to vector<8x16xf32>
    %8 = arith.addf %5, %7 : vector<8x16xf32>
    %c0_6 = arith.constant 0 : index
    %c0_7 = arith.constant 0 : index
    %9 = vector.load %arg4[%c0_6, %c0_7] : memref<8x16xf32, #tpu.memory_space<vmem>>, vector<8x16xf32>
    tpu.vector_store %arg4[%c0_6, %c0_7], %8 {strides = array<i32>} : memref<8x16xf32, #tpu.memory_space<vmem>>, vector<8x16xf32>,
    return
  }
  func.func @transform_0(%arg0: i32) -> (i32, i32, i32) {
    %c0_i32 = arith.constant 0 : i32
    %c0_i32_0 = arith.constant 0 : i32
    %c0_i32_1 = arith.constant 0 : i32
    return %arg0, %c0_i32, %c0_i32_0 : i32, i32, i32
  }
  func.func @transform_1(%arg0: i32) -> (i32, i32) {
    %c0_i32 = arith.constant 0 : i32
    %c0_i32_0 = arith.constant 0 : i32
    %c0_i32_1 = arith.constant 0 : i32
    return %c0_i32, %c0_i32_0 : i32, i32
  }
  func.func @transform_2(%arg0: i32) -> (i32, i32) {
    %c0_i32 = arith.constant 0 : i32
    %c0_i32_0 = arith.constant 0 : i32
    return %arg0, %c0_i32 : i32, i32
  }
  func.func @transform_3(%arg0: i32) -> (i32, i32) {
    %c0_i32 = arith.constant 0 : i32
    %c0_i32_0 = arith.constant 0 : i32
    return %arg0, %c0_i32 : i32, i32
  }
}

</mosaic_0001>

<bundles_post_ra>
// kernel: tpu_custom_call.1
= control target key start
LH: loop header
LB: loop body
LE: loop exit
PB: predicated region body
PF: predicated region fallthrough
CT: control target
= control target key end

     0   :  { %8 = vsyncpa [#allocation3], 0  ;;  %s875_s0 = inlined_call_operand.hbm [shape: f32[16,16,128], index: 0, kind: input, shape index: {}]   ;;  %s876_s1 = inlined_call_operand.vmem [shape: f32[1,128], index: 1, kind: input, shape index: {}]   ;;  %s877_s2 = inlined_call_operand.vmem [shape: f32[16,1], index: 2, kind: input, shape index: {}]   ;;  %s878_s3 = inlined_call_operand.hbm [shape: f32[16,16], index: 3, kind: output, shape index: {}]  }
   0x1   :  { %10 = vsyncpa [#allocation3 + $0x1], 0 }
   0x2   :  { %11 = vsyncpa [#allocation4], 0 }
   0x3   :  { %13 = vsyncpa [#allocation4 + $0x1], 0  ;;  %s713_s12 = smov 0   ;;  %s715_s13 = smov 0  }
   0x4   :  { %s717_s14 = smov 0   ;;  %s719_s15 = smov 0  }
   0x5 LB: > { %s734_s16 = sadd.s32 4294967295, %s688_s15   ;;  %s522_s17 = sadd.s32 4294967294, %s688_s15   ;;  %s688_s15 = sphi %s719_s15, %s888_s15   ;;  %s684_s14 = sphi %s717_s14, %s887_s14   ;;  %s680_s13 = sphi %s715_s13, %s886_s13   ;;  %s676_s12 = sphi %s713_s12, %s885_s12  }
   0x6   : > { %s738_s18 = sadd.s32 1, %s688_s15   ;;  %s26_s19 = sadd.s32 1, %s684_s14 }
   0x7   : > { %s23_s20 = ssub.s32 %s688_s15, %s738_s18  ;;  %p33_p0 = scmp.ne.s32.totalorder %s684_s14, %s680_s13 }
   0x8   : > { %p24_p1 = scmp.eq.s32.totalorder %s23_s20, 0  ;;  %p34_p2 = scmp.eq.s32.totalorder %s688_s15, 0 }
   0x9   : > { %p39_p3 = scmp.ne.s32.totalorder %s680_s13, %s676_s12  ;;  %p40_p4 = scmp.eq.s32.totalorder %s734_s16, 0 }
   0xa   : > { %s750_s21 = scalar_select %p24_p1, %s684_s14, %s26_s19  }
   0xb   : > { %p752_p5 = por %p34_p2, %p33_p0  ;;  %p756_p6 = por %p40_p4, %p39_p3 }
   0xc   : > { %p110_p7 = scmp.eq.s32.totalorder %s734_s16, 1  ;;  %p116_p8 = scmp.eq.s32.totalorder %s522_s17, 1 }
   0xd   : > { %p551_p10 = scmp.lt.s32.totalorder %s688_s15, 2  ;;  %s139_s26 = sand.u32 1, %s684_s14  }
   0xe   : > { %p763_p11 = por %p110_p7, %p33_p0  ;;  %p767_p12 = por %p116_p8, %p39_p3 }
   0xf   : > { %s538_s27 = sshll.u32 %s688_s15, 7  ;;  %s525_s28 = sshll.u32 %s139_s26, 7 }
  0x10   : > { %s149_s4 = scalar_lea.hbm %s875_s0, %s538_s27  ;;  %s143_s6 = scalar_lea.vmem [#allocation2], %s525_s28 }
  0x11   : > { %s150_s5 = sshll.u32 %s149_s4, 4  ;;  %s152_s7 = sshll.u32 %s143_s6, 4  ;;  %s151_s5 = int_to_ptr.hbm [resolvable:$true] %s150_s5  ;;  %s153_s7 = int_to_ptr.vmem [resolvable:$true] %s152_s7 }
  0x12   : > { %p778_p13 = pnand %p551_p10, %p752_p5  ;;  %p529_p0 = scmp.ge.s32.totalorder %s688_s15, 1 }
  0x13   : > { %p167_p1 = scmp.lt.s32.totalorder %s688_s15, 3  ;;  %s140_s9 = scalar_lea.sflag [#allocation3], %s139_s26 }
  0x14   : > { %s592_s10 = sshra.s32 %s151_s5, 4  ;;  %p596_p3 = pneg %p778_p13  ;;  %s593_s10 = int_to_ptr.hbm [resolvable:$true] %s592_s10 }
  0x15   : > { %s594_s11 = scalar_lea.hbm %s593_s10, 128  ;;  %s599_s20 = scalar_lea.hbm %s875_s0, 256 }
  0x16   : > { %p595_p2 = scmp.ne.s32.totalorder %s593_s10, %s594_s11  ;;  %p600_p5 = scmp.lt.s32.totalorder %s593_s10, %s875_s0 }
  0x17   : > { %p601_p8 = scmp.lt.s32.totalorder %s599_s20, %s594_s11 }
  0x18   : > { %p597_p4 = pnand %p596_p3, %p595_p2 }
  0x19   : > { %p602_p10 = por %p601_p8, %p600_p5 }
  0x1a   : > { %p598_p7 = pneg %p597_p4 }
  0x1c   : > { %p603_p9 = pnand %p602_p10, %p598_p7 }
  0x1e   : > { %606 = shalt.err (!%p603_p9)
}
  0x1f   : > { %s690_s26 = smov 128   ;;  %s691_s28 = smov 8  }
  0x20   : > { %546 = dma.hbm_to_vmem [thread:$0]  (!%p778_p13), %s151_s5, 2048, %s153_s7, %s140_s9, %s690_s26, %s690_s26, %s691_s28  }
  0x21   : > { %p168_p2 = pnand %p529_p0, %p167_p1 }
  0x22   : > { %s799_s29 = sand.u32 (!%p168_p2), 1, %s680_s13  }
  0x23   : > { %171 = sbr.rel (%p168_p2) target bundleno = 375 (0x177), region = 32  ;;  %s530_s30 = sshll.u32 (!%p168_p2), %s799_s29, 7 }
  0x24   : > { %s174_s4 = scalar_lea.sflag (!%p168_p2), [#allocation3], %s799_s29  ;;  %s803_s6 = scalar_lea.vmem (!%p168_p2), [#allocation2], %s530_s30 }
  0x28   : > { %667 = dma.done.wait (%p756_p6), %s174_s4, 2048  }
  0x29   : > { %669 = vsyncadd (%p756_p6), %s174_s4, 4294965248  ;;  %v212_v0 = vld [vmem:[%s803_s6 + $0x10] sm:$0xff]  ;;  %v591_v1 = vld [vmem:[%s876_s1] ss:$0 sm:$0xff]  ;;  %v692_v9 = vmov 0   ;;  %p206_p6 = scmp.lt.s32.totalorder %s734_s16, 1 }
  0x2a   : > { %v210_v2 = vld [vmem:[%s803_s6] sm:$0xff]  ;;  %v232_v3 = vmul.f32 %v591_v1, %v212_v0  ;;  %v213_v7 = vld [vmem:[%s803_s6 + $0x18] sm:$0xff]  ;;  %v211_v8 = vld [vmem:[%s803_s6 + $0x8] sm:$0xff]  ;;  %588 = vset.pattern.permute.xlu1 %v692_v9  ;;  %590 = vset.pattern.permute.xlu0 %v692_v9  ;;  %vm384_vm0 = vcmask 130112   ;;  %vm407_vm1 = vcmask 1041409   ;;  %vm409_vm2 = vcmask 1042434  }
  0x2b   : > { %v230_v4 = vmul.f32 %v591_v1, %v210_v2  ;;  %v214_v5 = vld [vmem:[%s803_s6 + $0x20] sm:$0xff]  ;;  %v215_v10 = vld [vmem:[%s803_s6 + $0x28] sm:$0xff]  ;;  %589 = vset.pattern.permute.xlu2 %v692_v9  ;;  %v233_v11 = vmul.f32 %v591_v1, %v213_v7  ;;  %v231_v12 = vmul.f32 %v591_v1, %v211_v8  ;;  %v217_v14 = vld [vmem:[%s803_s6 + $0x38] sm:$0xff]  ;;  %s207_s23 = scalar_select %p206_p6, %s734_s16, 1  ;;  %vm411_vm3 = vcmask 1043459  }
  0x2c   : > { %v234_v6 = vmul.f32 %v591_v1, %v214_v5  ;;  %250 = vadd.xlane.f32.xlu1 %v232_v3  ;;  %v235_v13 = vmul.f32 %v591_v1, %v215_v10  ;;  %v216_v15 = vld [vmem:[%s803_s6 + $0x30] sm:$0xff]  ;;  %v218_v16 = vld [vmem:[%s803_s6 + $0x40] sm:$0xff]  ;;  %v237_v17 = vmul.f32 %v591_v1, %v217_v14  ;;  %v219_v21 = vld [vmem:[%s803_s6 + $0x48] sm:$0xff]  ;;  %s531_s17 = sshll.u32 %s799_s29, 3  ;;  %s534_s19 = sshll.u32 %s734_s16, 3  ;;  %vm413_vm4 = vcmask 1044484  }
  0x2d   : > { %246 = vadd.xlane.f32.xlu0 %v230_v4  ;;  %v236_v18 = vmul.f32 %v591_v1, %v216_v15  ;;  %v238_v19 = vmul.f32 %v591_v1, %v218_v16  ;;  %v220_v20 = vld [vmem:[%s803_s6 + $0x50] sm:$0xff]  ;;  %v221_v22 = vld [vmem:[%s803_s6 + $0x58] sm:$0xff]  ;;  %v239_v24 = vmul.f32 %v591_v1, %v219_v21  ;;  %v223_v26 = vld [vmem:[%s803_s6 + $0x68] sm:$0xff]  ;;  %s532_s8 = sshll.u32 %s207_s23, 3  ;;  %v379_v21 = vlaneseq  ;;  %s435_s27 = scalar_lea.hbm %s878_s3, %s534_s19 }
  0x2e   : > { %254 = vadd.xlane.f32.xlu2 %v234_v6  ;;  %v240_v23 = vmul.f32 %v591_v1, %v220_v20  ;;  %v241_v25 = vmul.f32 %v591_v1, %v221_v22  ;;  %v222_v27 = vld [vmem:[%s803_s6 + $0x60] sm:$0xff]  ;;  %v224_v28 = vld [vmem:[%s803_s6 + $0x70] sm:$0xff]  ;;  %v243_v29 = vmul.f32 %v591_v1, %v223_v26  ;;  %v225_v32 = vld [vmem:[%s803_s6 + $0x78] sm:$0xff]  ;;  %s209_s11 = scalar_lea.vmem %s877_s2, %s532_s8  ;;  %vm415_vm5 = vcmask 1045509   ;;  %s204_s16 = scalar_lea.vmem [#allocation5], %s531_s17 }
  0x2f   : > { %v242_v30 = vmul.f32 %v591_v1, %v222_v27  ;;  %v244_v31 = vmul.f32 %v591_v1, %v224_v28  ;;  %v245_v33 = vmul.f32 %v591_v1, %v225_v32  ;;  %v278_v34 = vld [vmem:[%s209_s11] sm:$0xff]  ;;  %v380_v22 = vand.u32 127, %v379_v21  ;;  %s437_s26 = sshll.u32 %s204_s16, 4  ;;  %s439_s28 = sshll.u32 %s435_s27, 4  ;;  %s438_s26 = int_to_ptr.vmem [resolvable:$true] %s437_s26  ;;  %s440_s28 = int_to_ptr.hbm [resolvable:$true] %s439_s28 }
  0x30   : > { %vm417_vm6 = vcmask 1046534   ;;  %vm419_vm7 = vcmask 1047559   ;;  %vm422_vm8 = vcmask 130048   ;;  %s425_s30 = scalar_lea.sflag [#allocation4], %s799_s29  ;;  %s636_s4 = sshra.s32 %s440_s28, 4  ;;  %s637_s4 = int_to_ptr.hbm [resolvable:$true] %s636_s4 }
  0x31   : > { %s638_s6 = scalar_lea.hbm %s637_s4, 8  ;;  %s642_s23 = scalar_lea.hbm %s878_s3, 16 }
  0x32   : > { %p639_p9 = scmp.ne.s32.totalorder %s637_s4, %s638_s6  ;;  %p643_p1 = scmp.lt.s32.totalorder %s637_s4, %s878_s3 }
  0x33   : > { %p644_p3 = scmp.lt.s32.totalorder %s642_s23, %s638_s6 }
  0x34   : > { %252 = vadd.xlane.f32.xlu1 %v233_v11  ;;  %p640_p13 = pnand %p639_p9, %p763_p11 }
  0x35   : > { %248 = vadd.xlane.f32.xlu0 %v231_v12  ;;  %p645_p4 = por %p644_p3, %p643_p1 }
  0x36   : > { %256 = vadd.xlane.f32.xlu2 %v235_v13  ;;  %p641_p0 = pneg %p640_p13 }
  0x38   : > { %p646_p7 = pnand %p645_p4, %p641_p0 }
  0x3c   : > { %260 = vadd.xlane.f32.xlu1 %v237_v17 }
  0x3d   : > { %258 = vadd.xlane.f32.xlu0 %v236_v18 }
  0x3e   : > { %262 = vadd.xlane.f32.xlu2 %v238_v19 }
  0x44   : > { %266 = vadd.xlane.f32.xlu1 %v240_v23 }
  0x45   : > { %264 = vadd.xlane.f32.xlu0 %v239_v24  ;;  %v382_v24 = vadd.s32 4294967288, %v380_v22 }
  0x46   : > { %268 = vadd.xlane.f32.xlu2 %v241_v25 }
  0x4c   : > { %272 = vadd.xlane.f32.xlu1 %v243_v29 }
  0x4d   : > { %270 = vadd.xlane.f32.xlu0 %v242_v30 }
  0x4e   : > { %274 = vadd.xlane.f32.xlu2 %v244_v31 }
  0x55   : > { %276 = vadd.xlane.f32.xlu0 %v245_v33 }
  0x65   : > { %281 = vperm.xlu1 %588, %v278_v34  }
  0x9f   : > { %v251_v35 = vpop.xlane.xlu1 %250 }
  0xa0   : > { %v247_v41 = vpop.xlane.xlu0 %246 }
  0xa1   : > { %v255_v39 = vpop.xlane.xlu2 %254 }
  0xa7   : > { %v253_v36 = vpop.xlane.xlu1 %252 }
  0xa8   : > { %v249_v46 = vpop.xlane.xlu0 %248 }
  0xa9   : > { %v257_v42 = vpop.xlane.xlu2 %256 }
  0xaf   : > { %v261_v37 = vpop.xlane.xlu1 %260 }
  0xb0   : > { %v259_v59 = vpop.xlane.xlu0 %258 }
  0xb1   : > { %v263_v50 = vpop.xlane.xlu2 %262 }
  0xb7   : > { %v267_v38 = vpop.xlane.xlu1 %266 }
  0xb8   : > { %v265_v3 = vpop.xlane.xlu0 %264 }
  0xb9   : > { %v269_v56 = vpop.xlane.xlu2 %268 }
  0xbf   : > { %v273_v40 = vpop.xlane.xlu1 %272 }
  0xc0   : > { %v271_v8 = vpop.xlane.xlu0 %270 }
  0xc1   : > { %v275_v0 = vpop.xlane.xlu2 %274 }
  0xc8   : > { %v277_v10 = vpop.xlane.xlu0 %276 }
  0xd7   : > { %v282_v43 = vpop.permute.xlu1 %281 }
  0xd8   : > { %v284_v44 = vperm.slane %v282_v43, 1  ;;  %v283_v45 = vperm.slane %v282_v43, 0  ;;  %v285_v51 = vperm.slane %v282_v43, 2  ;;  %v287_v52 = vperm.slane %v282_v43, 4 }
  0xd9   : > { %v286_v57 = vperm.slane %v282_v43, 3  ;;  %v288_v58 = vperm.slane %v282_v43, 5  ;;  %v290_v63 = vperm.slane %v282_v43, 7  ;;  %v289_v5 = vperm.slane %v282_v43, 6 }
  0xda   : > { %v302_v47 = vadd.f32 %v284_v44, %v253_v36  ;;  %v299_v48 = vadd.f32 %v283_v45, %v247_v41  ;;  %v300_v49 = vadd.f32 %v283_v45, %v249_v46  ;;  %v304_v53 = vadd.f32 %v285_v51, %v257_v42 }
  0xdb   : > { %v301_v54 = vadd.f32 %v284_v44, %v251_v35  ;;  %v307_v55 = vadd.f32 %v287_v52, %v263_v50  ;;  %v306_v60 = vadd.f32 %v286_v57, %v261_v37  ;;  %v303_v61 = vadd.f32 %v285_v51, %v255_v39 }
  0xdc   : > { %341 = vperm.xlu1 %588, %v302_v47   ;;  %332 = vperm.xlu2 %589, %v299_v48   ;;  %v310_v62 = vadd.f32 %v288_v58, %v269_v56  ;;  %v309_v1 = vadd.f32 %v288_v58, %v267_v38  ;;  %v305_v2 = vadd.f32 %v286_v57, %v259_v59 }
  0xdd   : > { %335 = vperm.xlu0 %590, %v300_v49   ;;  %v313_v4 = vadd.f32 %v290_v63, %v275_v0  ;;  %v312_v6 = vadd.f32 %v289_v5, %v273_v40  ;;  %v308_v7 = vadd.f32 %v287_v52, %v265_v3  ;;  %v311_v9 = vadd.f32 %v289_v5, %v271_v8 }
  0xde   : > { %v314_v11 = vadd.f32 %v290_v63, %v277_v10 }
  0xe4   : > { %347 = vperm.xlu1 %588, %v304_v53   ;;  %338 = vperm.xlu2 %589, %v301_v54  }
  0xe5   : > { %356 = vperm.xlu0 %590, %v307_v55  }
  0xec   : > { %353 = vperm.xlu1 %588, %v306_v60   ;;  %344 = vperm.xlu2 %589, %v303_v61  }
  0xed   : > { %365 = vperm.xlu0 %590, %v310_v62  }
  0xf4   : > { %362 = vperm.xlu1 %588, %v309_v1   ;;  %350 = vperm.xlu2 %589, %v305_v2  }
  0xf5   : > { %374 = vperm.xlu0 %590, %v313_v4  }
  0xfc   : > { %371 = vperm.xlu1 %588, %v312_v6   ;;  %359 = vperm.xlu2 %589, %v308_v7  }
 0x104   : > { %368 = vperm.xlu2 %589, %v311_v9  }
 0x10c   : > { %377 = vperm.xlu2 %589, %v314_v11  }
 0x136   : > { %v333_v12 = vpop.permute.xlu2 %332 }
 0x137   : > { %v381_v30 = vperm.slane %v333_v12, %v380_v22 }
 0x13e   : > { %v339_v13 = vpop.permute.xlu2 %338 }
 0x13f   : > { %v386_v31 = vperm.slane %v339_v13, %v380_v22 }
 0x146   : > { %v345_v14 = vpop.permute.xlu2 %344 }
 0x147   : > { %v389_v34 = vperm.slane %v345_v14, %v380_v22 }
 0x14e   : > { %v342_v15 = vpop.permute.xlu1 %341  ;;  %v351_v16 = vpop.permute.xlu2 %350 }
 0x14f   : > { %v336_v17 = vpop.permute.xlu0 %335  ;;  %v387_v27 = vperm.slane %v342_v15, %v382_v24  ;;  %v392_v36 = vperm.slane %v351_v16, %v380_v22 }
 0x150   : > { %v383_v28 = vperm.slane %v336_v17, %v382_v24 }
 0x151   : > { %v388_v35 = vsel %vm384_vm0, %v387_v27, %v386_v31 }
 0x152   : > { %v385_v37 = vsel %vm384_vm0, %v383_v28, %v381_v30 }
 0x153   : > { %v408_v41 = vsel %vm407_vm1, %v388_v35, %v385_v37 }
 0x156   : > { %v348_v18 = vpop.permute.xlu1 %347  ;;  %v360_v19 = vpop.permute.xlu2 %359 }
 0x157   : > { %v357_v20 = vpop.permute.xlu0 %356  ;;  %v390_v29 = vperm.slane %v348_v18, %v382_v24  ;;  %v396_v42 = vperm.slane %v360_v19, %v382_v24 }
 0x158   : > { %v395_v43 = vperm.slane %v357_v20, %v380_v22 }
 0x159   : > { %v391_v38 = vsel %vm384_vm0, %v390_v29, %v389_v34 }
 0x15a   : > { %v410_v46 = vsel %vm409_vm2, %v391_v38, %v408_v41  ;;  %v397_v53 = vsel %vm384_vm0, %v396_v42, %v395_v43 }
 0x15e   : > { %v354_v23 = vpop.permute.xlu1 %353  ;;  %v369_v25 = vpop.permute.xlu2 %368 }
 0x15f   : > { %v366_v26 = vpop.permute.xlu0 %365  ;;  %v393_v32 = vperm.slane %v354_v23, %v382_v24  ;;  %v401_v54 = vperm.slane %v369_v25, %v380_v22 }
 0x160   : > { %v399_v47 = vperm.slane %v366_v26, %v382_v24 }
 0x161   : > { %v394_v39 = vsel %vm384_vm0, %v393_v32, %v392_v36 }
 0x162   : > { %v412_v48 = vsel %vm411_vm3, %v394_v39, %v410_v46 }
 0x163   : > { %v414_v56 = vsel %vm413_vm4, %v397_v53, %v412_v48 }
 0x166   : > { %v363_v33 = vpop.permute.xlu1 %362  ;;  %v378_v44 = vpop.permute.xlu2 %377 }
 0x167   : > { %v398_v40 = vperm.slane %v363_v33, %v380_v22  ;;  %v375_v45 = vpop.permute.xlu0 %374  ;;  %v405_v50 = vperm.slane %v378_v44, %v382_v24 }
 0x168   : > { %v404_v51 = vperm.slane %v375_v45, %v380_v22 }
 0x169   : > { %v400_v49 = vsel %vm384_vm0, %v399_v47, %v398_v40 }
 0x16a   : > { %v416_v57 = vsel %vm415_vm5, %v400_v49, %v414_v56  ;;  %v406_v59 = vsel %vm384_vm0, %v405_v50, %v404_v51 }
 0x16e   : > { %v372_v52 = vpop.permute.xlu1 %371 }
 0x16f   : > { %v402_v55 = vperm.slane %v372_v52, %v382_v24 }
 0x171   : > { %v403_v58 = vsel %vm384_vm0, %v402_v55, %v401_v54 }
 0x172   : > { %v418_v60 = vsel %vm417_vm6, %v403_v58, %v416_v57 }
 0x173   : > { %v420_v61 = vsel %vm419_vm7, %v406_v59, %v418_v60 }
 0x174   : > { %423 = vst.msk [vmem:[%s204_s16] sm:$0xff] %vm422_vm8, %v420_v61 }
 0x175   : > { %649 = shalt.err (!%p646_p7)
}
 0x176   : > { %541 = dma.vmem_to_hbm [thread:$0]  (%p763_p11), %s438_s26, 128, %s440_s28, %s425_s30  }
 0x177 PF: > { %s451_s29 = sand.u32 1, %s676_s12   ;;  %p884_p5 = scmp.ge.s32.totalorder %s688_s15, 2 }
 0x178   : > { %s452_s10 = scalar_lea.sflag [#allocation4], %s451_s29 }
 0x179   : > { %p548_p8 = pnand %p884_p5, %p767_p12 }
 0x17b   : > { %p549_p10 = pneg %p548_p8 }
 0x17d   : > { %671 = dma.done.wait (%p549_p10), %s452_s10, 128  }
 0x17e   : > { %673 = vsyncadd (%p549_p10), %s452_s10, 4294967168  ;;  %p16_p2 = scmp.ge.s32.totalorder %s738_s18, 4   ;;  %s885_s12 = smov %s680_s13 }
 0x17f   : > { %s886_s13 = smov %s684_s14  ;;  %s887_s14 = smov %s750_s21 }
 0x180   : > { %s888_s15 = smov %s738_s18  ;;  %18 = sbr.rel (!%p16_p2) target bundleno = 5 (0x5), region = 80 }
 0x185   :  { %458 = vsyncpa [#allocation3], 1 }
 0x186   :  { %460 = vsyncpa [#allocation3 + $0x1], 1 }
 0x187   :  { %461 = vsyncpa [#allocation4], 1 }
 0x188   :  { %463 = vsyncpa [#allocation4 + $0x1], 1 }

</bundles_post_ra>
